<compile_context>
chip_gen: v6e
topology: v6e:2x2x1
jax: 0.10.0
libtpu: 0.0.40
codegen_flags: <defaults>
</compile_context>

<pallas_src>
from functools import partial

import jax
import jax.numpy as jnp
from jax.experimental import pallas as pl
from jax.experimental.pallas import tpu as pltpu


def _patch_embed_kernel(t_ref, w_ref, pos_ref, o_ref, *, bb):
    # t_ref:   (bb, tn, K)     bf16  token rows (sequence row 0 is all-zero -> cls slot)
    # w_ref:   (K, E_pad)      bf16  projection weight (resident across the grid)
    # pos_ref: (tn, E_pad)     bf16  positions (+ conv bias; row 0 = cls + pos[0])
    # o_ref:   (bb, tn, E_pad) f32
    w = w_ref[...]
    pos = pos_ref[...].astype(jnp.float32)
    for i in range(bb):  # small static unroll over the batch block
        y = jnp.dot(t_ref[i], w, preferred_element_type=jnp.float32)
        o_ref[i] = (y + pos).astype(o_ref.dtype)


def prepare_patch_embedding_params(conv_w, conv_b, cls_token, positions):
    """One-time parameter prep (keep OUTSIDE the jitted forward, reuse across calls).

    Returns:
      w_mat:    (K, E_pad)   bf16  conv weight as a lane-padded matmul weight.
      pos_full: (N+1, E_pad) bf16  row 0 = cls_token + positions[0];
                                   rows 1..N = positions[1:] + conv bias.
    """
    E, C, p, _ = conv_w.shape
    K = C * p * p
    E_pad = -(-E // 128) * 128
    w_mat = conv_w.reshape(E, K).T.astype(jnp.float32)           # (K, E)
    pos_full = jnp.concatenate(
        [cls_token.reshape(1, E) + positions[0:1],
         positions[1:] + conv_b[None, :]], axis=0)               # (N+1, E)
    if E_pad != E:
        w_mat = jnp.pad(w_mat, ((0, 0), (0, E_pad - E)))
        pos_full = jnp.pad(pos_full, ((0, 0), (0, E_pad - E)))
    return w_mat.astype(jnp.bfloat16), pos_full.astype(jnp.bfloat16)


@partial(jax.jit, static_argnames=("patch_size", "emb_size"))
def patch_embedding_forward(x, w_mat, pos_full, *, patch_size, emb_size):
    """x: (B, C, H, W) float32. Returns (B, N+1, emb_size) float32."""
    B, C, H, W = x.shape
    p = patch_size
    hP, wP = H // p, W // p
    N = hP * wP
    K = C * p * p
    T = N + 1                                   # cls token + patch tokens
    Kw, E_pad = w_mat.shape
    assert Kw == K and pos_full.shape == (T, E_pad)

    # --- glue: patchify -> (B, N, K) bf16, plus a leading all-zero token row.
    # The zero row makes the kernel uniform: token 0 = 0 @ W + (cls + pos[0]).
    # TODO(synk): fuse this rearrange into the kernel (extra HBM pass today).
    patches = x.reshape(B, C, hP, p, wP, p).transpose(0, 2, 4, 1, 3, 5)
    patches = patches.reshape(B, N, K).astype(jnp.bfloat16)
    tokens = jnp.pad(patches, ((0, 0), (1, 0), (0, 0)))          # (B, T, K)

    # --- tile selection ------------------------------------------------------
    def vmem_bytes(bb_, tn_):
        return (2 * bb_ * tn_ * K * 2           # tokens, bf16, double-buffered
                + 2 * bb_ * tn_ * E_pad * 4     # output, f32, double-buffered
                + 2 * K * E_pad * 2             # weight, bf16
                + 2 * tn_ * E_pad * 2)          # positions, bf16

    BUDGET = 12 * 1024 * 1024    # fits default scoped VMEM on v5e/v6e/v7x
    tn = T if vmem_bytes(1, T) <= BUDGET else 256    # full token dim when it fits
    bb = 1
    for cand in (8, 4, 2):
        if B % cand == 0 and B // cand >= 2 and vmem_bytes(cand, tn) <= BUDGET:
            bb = cand
            break

    # Batch innermost: weight + positional tiles stay resident across the batch loop.
    grid = (pl.cdiv(T, tn), B // bb)

    out = pl.pallas_call(
        partial(_patch_embed_kernel, bb=bb),
        out_shape=jax.ShapeDtypeStruct((B, T, E_pad), jnp.float32),
        grid_spec=pltpu.PrefetchScalarGridSpec(
            num_scalar_prefetch=0,
            grid=grid,
            in_specs=[
                pl.BlockSpec((bb, tn, K), lambda j, b: (b, j, 0)),
                # TODO(synk): pipeline_mode=pl.Buffered(1) would drop one
                # redundant VMEM buffer for this never-changing weight block.
                pl.BlockSpec((K, E_pad), lambda j, b: (0, 0)),
                pl.BlockSpec((tn, E_pad), lambda j, b: (j, 0)),
            ],
            out_specs=pl.BlockSpec((bb, tn, E_pad), lambda j, b: (b, j, 0)),
        ),
        compiler_params=pltpu.CompilerParams(
            dimension_semantics=("parallel", "parallel")),
    )(tokens, w_mat, pos_full)

    # Drop lane padding (no-op when emb_size is already a multiple of 128).
    return out if E_pad == emb_size else out[:, :, :emb_size]


if __name__ == "__main__":
    # Small, module-consistent shapes.
    B, C, IMG, P, E = 2, 4, 16, 4, 32
    N = (IMG // P) ** 2  # 16 patch tokens

    key = jax.random.PRNGKey(0)
    k_x, k_w, k_b, k_cls, k_pos = jax.random.split(key, 5)

    x = jax.random.normal(k_x, (B, C, IMG, IMG), dtype=jnp.float32)
    conv_w = jax.random.normal(k_w, (E, C, P, P), dtype=jnp.float32) * 0.02
    conv_b = jax.random.normal(k_b, (E,), dtype=jnp.float32) * 0.02
    cls_token = jax.random.normal(k_cls, (1, 1, E), dtype=jnp.float32)
    positions = jax.random.normal(k_pos, (N + 1, E), dtype=jnp.float32)

    # One-time parameter prep (outside jit), then the fused forward.
    w_mat, pos_full = prepare_patch_embedding_params(conv_w, conv_b,
                                                     cls_token, positions)
    out = patch_embedding_forward(x, w_mat, pos_full, patch_size=P, emb_size=E)
    out = jax.block_until_ready(out)
    assert out.shape == (B, N + 1, E), out.shape

    # Pure-JAX f32 reference (strided conv == patchify + matmul).
    ref_conv = jax.lax.conv_general_dilated(
        x, conv_w, window_strides=(P, P), padding="VALID",
        dimension_numbers=("NCHW", "OIHW", "NCHW"),
    ) + conv_b[None, :, None, None]
    ref_tokens = ref_conv.reshape(B, E, N).transpose(0, 2, 1)       # b (h w) e
    ref_cls = jnp.broadcast_to(cls_token, (B, 1, E))
    ref = jnp.concatenate([ref_cls, ref_tokens], axis=1) + positions[None]
    # Tolerance loosened for bf16 matmul inputs / bf16 positional stream
    # (f32 accumulation in-kernel).
    assert jnp.allclose(out, ref, atol=5e-2, rtol=5e-2), \
        float(jnp.max(jnp.abs(out - ref)))

    print("KERNEL_OK")
</pallas_src>

<mosaic_0001>
module attributes {stable_mosaic.version = 11 : i64} {
  func.func @_patch_embed_kernel(%arg0: i32, %arg1: i32, %arg2: memref<1x17x64xbf16, #tpu.memory_space<vmem>>, %arg3: memref<64x128xbf16, #tpu.memory_space<vmem>>, %arg4: memref<17x128xbf16, #tpu.memory_space<vmem>>, %arg5: memref<1x17x128xf32, #tpu.memory_space<vmem>>) attributes {dimension_semantics = [#tpu.dimension_semantics<parallel>, #tpu.dimension_semantics<parallel>], iteration_bounds = array<i64: 1, 2>, scalar_prefetch = 0 : i64, scratch_operands = 0 : i64, tpu.core_type = #tpu.core_type<tc>, window_params = [{transform_indices = @transform_0, window_bounds = array<i64: 1, 17, 64>}, {pipeline_mode = #tpu.pipeline_mode<synchronous>, transform_indices = @transform_1, window_bounds = array<i64: 64, 128>}, {transform_indices = @transform_2, window_bounds = array<i64: 17, 128>}, {transform_indices = @transform_3, window_bounds = array<i64: 1, 17, 128>}]} {
    %c0 = arith.constant 0 : index
    %c0_0 = arith.constant 0 : index
    %0 = vector.load %arg3[%c0, %c0_0] : memref<64x128xbf16, #tpu.memory_space<vmem>>, vector<64x128xbf16>
    %c0_1 = arith.constant 0 : index
    %c0_2 = arith.constant 0 : index
    %1 = vector.load %arg4[%c0_1, %c0_2] : memref<17x128xbf16, #tpu.memory_space<vmem>>, vector<17x128xbf16>
    %2 = arith.extf %1 : vector<17x128xbf16> to vector<17x128xf32>
    %c0_3 = arith.constant 0 : index
    %c0_4 = arith.constant 0 : index
    %c0_5 = arith.constant 0 : index
    %3 = vector.load %arg2[%c0_3, %c0_4, %c0_5] : memref<1x17x64xbf16, #tpu.memory_space<vmem>>, vector<1x17x64xbf16>
    %4 = vector.shape_cast %3 : vector<1x17x64xbf16> to vector<17x64xbf16>
    %cst = arith.constant dense<0.000000e+00> : vector<17x128xf32>
    %5 = tpu.matmul %4, %0, %cst {dimension_numbers = #tpu.dot_dimension_numbers<[1], [0], [0], [1], [0, 0, 1, 1], [], []>} : vector<17x64xbf16>, vector<64x128xbf16>, vector<17x128xf32> -> vector<17x128xf32>
    %6 = arith.addf %5, %2 : vector<17x128xf32>
    %c0_6 = arith.constant 0 : index
    %c0_7 = arith.constant 0 : index
    %c0_8 = arith.constant 0 : index
    %7 = vector.load %arg5[%c0_6, %c0_7, %c0_8] : memref<1x17x128xf32, #tpu.memory_space<vmem>>, vector<1x17x128xf32>
    %8 = vector.shape_cast %7 : vector<1x17x128xf32> to vector<17x128xf32>
    %9 = vector.shape_cast %6 : vector<17x128xf32> to vector<1x17x128xf32>
    tpu.vector_store %arg5[%c0_6, %c0_7, %c0_8], %9 {strides = array<i32>} : memref<1x17x128xf32, #tpu.memory_space<vmem>>, vector<1x17x128xf32>,
    return
  }
  func.func @transform_0(%arg0: i32, %arg1: i32) -> (i32, i32, i32) {
    %c0_i32 = arith.constant 0 : i32
    %c0_i32_0 = arith.constant 0 : i32
    return %arg1, %arg0, %c0_i32 : i32, i32, i32
  }
  func.func @transform_1(%arg0: i32, %arg1: i32) -> (i32, i32) {
    %c0_i32 = arith.constant 0 : i32
    %c0_i32_0 = arith.constant 0 : i32
    %c0_i32_1 = arith.constant 0 : i32
    return %c0_i32, %c0_i32_0 : i32, i32
  }
  func.func @transform_2(%arg0: i32, %arg1: i32) -> (i32, i32) {
    %c0_i32 = arith.constant 0 : i32
    %c0_i32_0 = arith.constant 0 : i32
    return %arg0, %c0_i32 : i32, i32
  }
  func.func @transform_3(%arg0: i32, %arg1: i32) -> (i32, i32, i32) {
    %c0_i32 = arith.constant 0 : i32
    %c0_i32_0 = arith.constant 0 : i32
    return %arg1, %arg0, %c0_i32 : i32, i32, i32
  }
}

</mosaic_0001>

<bundles_post_ra>
// kernel: patch_embedding_forward.1
= control target key start
LH: loop header
LB: loop body
LE: loop exit
PB: predicated region body
PF: predicated region fallthrough
CT: control target
= control target key end

     0   :  { %s558_s12 = smov 0   ;;  %s560_s13 = smov 0   ;;  %s609_s0 = inlined_call_operand.vmem [shape: bf16[2,17,64], index: 0, kind: input, shape index: {}]   ;;  %s610_s1 = inlined_call_operand.vmem [shape: bf16[64,128], index: 1, kind: input, shape index: {}]   ;;  %s611_s2 = inlined_call_operand.vmem [shape: bf16[17,128], index: 2, kind: input, shape index: {}]   ;;  %s612_s3 = inlined_call_operand.vmem [shape: f32[2,17,128], index: 3, kind: output, shape index: {}]  }
   0x1   :  { %s562_s14 = smov 0  }
   0x2 LB: > { %s22_s15 = sadd.s32 1, %s532_s13  ;;  %p447_p0 = scmp.ge.s32.totalorder %s536_s14, 1  ;;  %s536_s14 = sphi %s562_s14, %s13_s14   ;;  %s532_s13 = sphi %s560_s13, %s614_s13   ;;  %s528_s12 = sphi %s558_s12, %s613_s12  }
   0x3   : > { %p23_p1 = scmp.ge.s32.totalorder %s22_s15, 2  ;;  %p169_p2 = scmp.lt.s32.totalorder %s536_s14, 3 }
   0x5   : > { %s616_s15 = smov (%p23_p1, %s22_s15), 0  ;;  %p170_p3 = pnand %p447_p0, %p169_p2 }
   0x6   : > { %p207_p4 = scmp.lt.s32.totalorder (!%p170_p3), %s528_s12, 1 }
   0x7   : > { %173 = sbr.rel (%p170_p3) target bundleno = 231 (0xe7), region = 32 }
   0xc   : > { %v508_v0 = vld [vmem:[%s610_s1 + $0x18] sm:$0xff]   ;;  %v509_v1 = vld [vmem:[%s610_s1 + $0x10] sm:$0xff]   ;;  %s618_s12 = smov (!%p207_p4, %s528_s12), 1  ;;  %v510_v2 = vld [vmem:[%s610_s1 + $0x8] sm:$0xff]   ;;  %vm282_vm0 = vcmask 523264  }
   0xd   : > { %470 = vmatprep.subr.bf16.mxu0 %v508_v0  ;;  %s482_s22 = smul.u32 12, %s618_s12  ;;  %v511_v3 = vld [vmem:[%s610_s1] sm:$0xff]   ;;  %v243_v6 = vld [vmem:[%s611_s2 + $0x8] sm:$0x1] }
   0xe   : > { %471 = vmatpush3.bf16.msra.mxu0 %v508_v0  ;;  %s483_s30 = smul.u32 24, %s618_s12  ;;  %v461_v7 = vld [vmem:[%s611_s2] sm:$0xff]   ;;  %v246_v8 = vunpack.c.l.bf16 %v243_v6 }
   0xf   : > { %472 = vmatprep.subr.bf16.mxu0 %v509_v1  ;;  %s214_s25 = scalar_lea.vmem %s609_s0, %s482_s22  ;;  %v462_v9 = vunpack.c.l.bf16 %v461_v7  ;;  %v463_v14 = vunpack.c.h.bf16 %v461_v7 }
  0x10   : > { %v512_v4 = vld [vmem:[%s214_s25] sm:$0xff]   ;;  %v513_v5 = vld [vmem:[%s214_s25 + $0x8] ss:$0 sps:$4 sm:$0x11]   ;;  %s230_s8 = scalar_lea.vmem %s612_s3, %s483_s30 }
  0x11   : > { %478 = vmatprep.mubr.msk.bf16.mxu0 %vm282_vm0, %v512_v4 }
  0x12   : > { %473 = vmatpush3.bf16.msra.mxu0 %v509_v1 }
  0x13   : > { %474 = vmatprep.subr.bf16.mxu0 %v510_v2 }
  0x16   : > { %475 = vmatpush3.bf16.msra.mxu0 %v510_v2 }
  0x17   : > { %476 = vmatprep.subr.bf16.mxu0 %v511_v3 }
  0x1a   : > { %477 = vmatpush3.bf16.msra.mxu0 %v511_v3 }
  0x1d   : > { %479 = vmatmul.mubr.msk.bf16.vlgmr.msra.gmra.mxu0 %vm282_vm0, %v513_v5 }
  0xdd   : > { %v480_v10 = vpop.f32.mrf.mxu0 }
  0xde   : > { %v332_v11 = vadd.f32 %v480_v10, %v246_v8 }
  0xdf   : > { %v323_v12 = vpop.f32.mrf.mxu0 }
  0xe0   : > { %339 = vst [vmem:[%s230_s8 + $0x10] sm:$0x1] %v332_v11  ;;  %v324_v13 = vadd.f32 %v462_v9, %v323_v12 }
  0xe1   : > { %v481_v15 = vpop.f32.mrf.mxu0 }
  0xe2   : > { %337 = vst [vmem:[%s230_s8] sm:$0xff] %v324_v13 }
  0xe3   : > { %v326_v16 = vpop.f32.mrf.mxu0 }
  0xe4   : > { %v327_v17 = vadd.f32 %v463_v14, %v326_v16 }
  0xe6   : > { %338 = vst [vmem:[%s230_s8 + $0x8] sm:$0xff] %v327_v17 }
  0xe7 PF: > { %s13_s14 = sadd.s32 1, %s536_s14   ;;  %s613_s12 = smov %s532_s13 }
  0xe8   : > { %p10_p5 = scmp.ge.s32.totalorder %s13_s14, 4   ;;  %s614_s13 = smov %s616_s15 }
  0xea   :  { %12 = sbr.rel (!%p10_p5) target bundleno = 2 (0x2), region = 65 }

</bundles_post_ra>
